<compile_context>
chip_gen: v6e
topology: v6e:2x2x1
jax: 0.10.0
libtpu: 0.0.40
codegen_flags: <defaults>
</compile_context>

<pallas_src>
import functools
import math

import jax
import jax.numpy as jnp
from jax.experimental import pallas as pl
from jax.experimental.pallas import tpu as pltpu


# ---------------------------------------------------------------------------
# PE table (mirrors the PyTorch registered-buffer construction)
# ---------------------------------------------------------------------------
def make_pe_table(max_len, d_model):
    assert d_model % 2 == 0, "d_model must be even (sin/cos interleave)"
    position = jnp.arange(max_len, dtype=jnp.float32)[:, None]              # (L, 1)
    div_term = jnp.exp(jnp.arange(0, d_model, 2, dtype=jnp.float32)
                       * (-math.log(10000.0) / d_model))                    # (d/2,)
    ang = position * div_term                                               # (L, d/2)
    pe = jnp.zeros((max_len, d_model), jnp.float32)
    pe = pe.at[:, 0::2].set(jnp.sin(ang))
    pe = pe.at[:, 1::2].set(jnp.cos(ang))
    return pe                                                               # (L, d)


# ---------------------------------------------------------------------------
# Kernels
# ---------------------------------------------------------------------------
def _tile_lanes(a, reps):
    """Tile `a` along its last (lane) axis `reps` times using lane concats."""
    if reps == 1:
        return a
    half = _tile_lanes(a, reps // 2)
    out = jnp.concatenate([half, half], axis=-1)
    if reps % 2:
        out = jnp.concatenate([out, a], axis=-1)
    return out


def _pe_add_kernel_3d(x_ref, pe_ref, o_ref):
    # x_ref/o_ref: (seq_block, batch, d_model); pe_ref: (seq_block, d_model)
    o_ref[...] = x_ref[...] + pe_ref[...][:, None, :]


def _pe_add_kernel_flat(x_ref, pe_ref, o_ref, *, batch):
    # Lane-dense path: x_ref/o_ref: (seq_block, batch*d_model);
    # pe_ref: (seq_block, d_model) tiled across the batch*d lane axis.
    o_ref[...] = x_ref[...] + _tile_lanes(pe_ref[...], batch)


# ---------------------------------------------------------------------------
# Block sizing: ~4 MiB of x per grid step, padding-aware accounting.
# ---------------------------------------------------------------------------
_TARGET_BLOCK_BYTES = 8 * 1024 * 1024   # x + out + pe bytes per grid step
                                        # (=> ~4 MiB x block; double-buffered
                                        #  this is well under the 32 MiB
                                        #  default scoped VMEM on v5e/v6e/v7x)


def _round_up(x, m):
    return ((x + m - 1) // m) * m


def _sublane_tile(itemsize):
    # f32 -> 8, bf16 -> 16, int8/fp8 -> 32
    return max(8, 32 // itemsize)


def _choose_seq_block(s, row_bytes):
    max_rows = max(int(_TARGET_BLOCK_BYTES // max(row_bytes, 1)), 8)
    max_rows = max((max_rows // 8) * 8, 8)
    if max_rows >= s:
        # One block covers everything; don't force a split (no benefit on the
        # single-TensorCore v5e/v6e, and per-step overhead is ~0.35 us anyway).
        return s
    n_steps = pl.cdiv(s, max_rows)
    if n_steps % 2:
        n_steps += 1                 # even, near-equal steps: v7x 2-TC balance
    sb = _round_up(pl.cdiv(s, n_steps), 8)
    return min(sb, s)


# ---------------------------------------------------------------------------
# Wrapper
# ---------------------------------------------------------------------------
def positional_encoding(x, pe_table=None, *, seq_block=None):
    """x: (seq_len, batch, d_model). Returns x + pe[:seq_len] (eval-mode dropout)."""
    s, b, d = x.shape
    if pe_table is None:
        pe_table = make_pe_table(s, d)
    if pe_table.ndim == 3:                       # accept torch-style (L, 1, d)
        pe_table = pe_table.reshape(pe_table.shape[0], pe_table.shape[-1])
    assert pe_table.shape[0] >= s and pe_table.shape[-1] == d, (
        f"pe_table shape {pe_table.shape} incompatible with x shape {x.shape}")
    pe = pe_table[:s].astype(x.dtype)            # stream the table in x's dtype

    itemsize = jnp.dtype(x.dtype).itemsize
    sub = _sublane_tile(itemsize)
    # Lane-dense path for small heads / small batch (masked-store avoidance).
    flat = (d % 128 != 0) or (b % sub != 0)

    if flat:
        row_bytes = itemsize * (2 * _round_up(b * d, 128) + _round_up(d, 128))
    else:
        row_bytes = itemsize * (2 * _round_up(b, sub) + 1) * _round_up(d, 128)

    if seq_block is None:
        seq_block = _choose_seq_block(s, row_bytes)
    seq_block = max(1, min(int(seq_block), s))
    if seq_block < s:
        seq_block = min(_round_up(seq_block, 8), s)   # keep (8,128) tiling legal
    grid = (pl.cdiv(s, seq_block),)

    cost = pl.CostEstimate(
        flops=s * b * d,
        transcendentals=0,
        bytes_accessed=(2 * s * b * d + s * d) * itemsize,
    )
    cparams = pltpu.CompilerParams(dimension_semantics=("parallel",))

    if flat:
        out = pl.pallas_call(
            functools.partial(_pe_add_kernel_flat, batch=b),
            out_shape=jax.ShapeDtypeStruct((s, b * d), x.dtype),
            grid_spec=pl.GridSpec(
                grid=grid,
                in_specs=[
                    pl.BlockSpec((seq_block, b * d), lambda i: (i, 0)),
                    pl.BlockSpec((seq_block, d), lambda i: (i, 0)),
                ],
                out_specs=pl.BlockSpec((seq_block, b * d), lambda i: (i, 0)),
            ),
            compiler_params=cparams,
            cost_estimate=cost,
            input_output_aliases={0: 0},     # out may reuse x's buffer
        )(x.reshape(s, b * d), pe)
        return out.reshape(s, b, d)

    return pl.pallas_call(
        _pe_add_kernel_3d,
        out_shape=jax.ShapeDtypeStruct((s, b, d), x.dtype),
        grid_spec=pl.GridSpec(
            grid=grid,
            in_specs=[
                pl.BlockSpec((seq_block, b, d), lambda i: (i, 0, 0)),
                pl.BlockSpec((seq_block, d), lambda i: (i, 0)),
            ],
            out_specs=pl.BlockSpec((seq_block, b, d), lambda i: (i, 0, 0)),
        ),
        compiler_params=cparams,
        cost_estimate=cost,
        input_output_aliases={0: 0},
    )(x, pe)


# ---------------------------------------------------------------------------
# Pure-JAX reference (mirrors the PyTorch forward in eval mode)
# ---------------------------------------------------------------------------
def positional_encoding_ref(x):
    s, _, d = x.shape
    pe = make_pe_table(s, d)
    return (x.astype(jnp.float32) + pe[:, None, :]).astype(x.dtype)


if __name__ == "__main__":
    # 1) Module-like small shapes (S, B, D) = (8, 2, 32): exercises the
    #    lane-dense flat path (d_model < 128, batch < sublane tile).
    x = jax.random.normal(jax.random.PRNGKey(0), (8, 2, 32), dtype=jnp.float32)
    ref = positional_encoding_ref(x)                  # ref before (x may be aliased)
    out = jax.block_until_ready(positional_encoding(x))
    assert out.shape == x.shape and out.dtype == x.dtype
    assert jnp.allclose(out, ref, atol=1e-5, rtol=1e-5), "mismatch (flat path)"

    # 2) Non-divisible seq_len with an explicit block: partial tail + grid=(2,)
    #    on the flat path.
    x2 = jax.random.normal(jax.random.PRNGKey(1), (12, 2, 32), dtype=jnp.float32)
    ref2 = positional_encoding_ref(x2)
    out2 = jax.block_until_ready(positional_encoding(x2, seq_block=8))
    assert jnp.allclose(out2, ref2, atol=1e-5, rtol=1e-5), "mismatch (flat partial)"

    # 3) Dense shapes (d_model % 128 == 0, batch >= 8): the 3-D broadcast-add
    #    path with a 2-D PE block and a partial last seq block.
    x3 = jax.random.normal(jax.random.PRNGKey(2), (24, 8, 128), dtype=jnp.float32)
    ref3 = positional_encoding_ref(x3)
    out3 = jax.block_until_ready(positional_encoding(x3, seq_block=16))
    assert jnp.allclose(out3, ref3, atol=1e-5, rtol=1e-5), "mismatch (3-D path)"

    print("KERNEL_OK")
</pallas_src>

<mosaic_0001>
module attributes {stable_mosaic.version = 11 : i64} {
  func.func @_pe_add_kernel_flat(%arg0: i32, %arg1: memref<8x64xf32, #tpu.memory_space<vmem>>, %arg2: memref<8x32xf32, #tpu.memory_space<vmem>>, %arg3: memref<8x64xf32, #tpu.memory_space<vmem>>) attributes {dimension_semantics = [#tpu.dimension_semantics<parallel>], iteration_bounds = array<i64: 1>, scalar_prefetch = 0 : i64, scratch_operands = 0 : i64, tpu.core_type = #tpu.core_type<tc>, window_params = [{transform_indices = @transform_0, window_bounds = array<i64: 8, 64>}, {transform_indices = @transform_1, window_bounds = array<i64: 8, 32>}, {transform_indices = @transform_2, window_bounds = array<i64: 8, 64>}]} {
    %c0 = arith.constant 0 : index
    %c0_0 = arith.constant 0 : index
    %0 = vector.load %arg1[%c0, %c0_0] : memref<8x64xf32, #tpu.memory_space<vmem>>, vector<8x64xf32>
    %c0_1 = arith.constant 0 : index
    %c0_2 = arith.constant 0 : index
    %1 = vector.load %arg2[%c0_1, %c0_2] : memref<8x32xf32, #tpu.memory_space<vmem>>, vector<8x32xf32>
    %2 = tpu.concatenate %1, %1 in 1 : vector<8x32xf32>, vector<8x32xf32> -> vector<8x64xf32>
    %3 = arith.addf %0, %2 : vector<8x64xf32>
    %c0_3 = arith.constant 0 : index
    %c0_4 = arith.constant 0 : index
    %4 = vector.load %arg3[%c0_3, %c0_4] : memref<8x64xf32, #tpu.memory_space<vmem>>, vector<8x64xf32>
    tpu.vector_store %arg3[%c0_3, %c0_4], %3 {strides = array<i32>} : memref<8x64xf32, #tpu.memory_space<vmem>>, vector<8x64xf32>,
    return
  }
  func.func @transform_0(%arg0: i32) -> (i32, i32) {
    %c0_i32 = arith.constant 0 : i32
    %c0_i32_0 = arith.constant 0 : i32
    return %arg0, %c0_i32 : i32, i32
  }
  func.func @transform_1(%arg0: i32) -> (i32, i32) {
    %c0_i32 = arith.constant 0 : i32
    %c0_i32_0 = arith.constant 0 : i32
    return %arg0, %c0_i32 : i32, i32
  }
  func.func @transform_2(%arg0: i32) -> (i32, i32) {
    %c0_i32 = arith.constant 0 : i32
    %c0_i32_0 = arith.constant 0 : i32
    return %arg0, %c0_i32 : i32, i32
  }
}

</mosaic_0001>

<bundles_post_ra>
// kernel: tpu_custom_call.1
= control target key start
LH: loop header
LB: loop body
LE: loop exit
PB: predicated region body
PF: predicated region fallthrough
CT: control target
= control target key end

     0   :  { %7 = vsyncpa [#allocation3], 0  ;;  %s124_s0 = inlined_call_operand.hbm [shape: f32[8,64], index: 0, kind: input, shape index: {}, may-alias: {0,2}]   ;;  %s125_s1 = inlined_call_operand.vmem [shape: f32[8,32], index: 1, kind: input, shape index: {}]   ;;  %s126_s2 = inlined_call_operand.hbm [shape: f32[8,64], index: 2, kind: output, shape index: {}, may-alias: {0,2}]  }
   0x1   :  { %8 = vsyncpa [#allocation4], 0  ;;  %s97_s9 = smov [#allocation2]  }
   0x2   :  { %s15_s10 = sshll.u32 %s97_s9, 4  ;;  %s16_s10 = int_to_ptr.vmem [resolvable:$true] %s15_s10 }
   0x3   :  { %s61_s11 = scalar_lea.vmem %s16_s10, 128  ;;  %p66_p1 = scmp.lt.s32.totalorder %s16_s10, %s16_s10 }
   0x4   :  { %p62_p0 = scmp.ne.s32.totalorder %s16_s10, %s61_s11  ;;  %p67_p2 = scmp.lt.s32.totalorder %s61_s11, %s61_s11 }
   0x6   :  { %p68_p3 = por %p67_p2, %p66_p1 }
   0x8   :  { %p69_p4 = pnand %p68_p3, %p62_p0 }
   0xa   :  { %72 = shalt.err (!%p69_p4)
}
   0xb   :  { %18 = dma.hbm_to_vmem [thread:$0]  %s124_s0, 128, %s16_s10, [#allocation3]  }
   0xc   :  { %93 = dma.done.wait [#allocation3], 128  }
   0xd   :  { %94 = vsyncadd [#allocation3], 4294967168  ;;  %v25_v0 = vld [vmem:[%s125_s1] sm:$0xff]  ;;  %s98_s16 = smov 32   ;;  %vm30_vm0 = vcmask 261120   ;;  %s99_s17 = smov [#allocation5]  }
   0xe   :  { %27 = vrot.lane.b32.xlu0 %v25_v0, %s98_s16  ;;  %v24_v1 = vld [vmem:[#allocation2] sm:$0xff]  ;;  %s41_s18 = sshll.u32 %s99_s17, 4  ;;  %vm33_vm1 = vcmask 523264   ;;  %s42_s18 = int_to_ptr.vmem [resolvable:$true] %s41_s18 }
   0xf   :  { %s73_s19 = scalar_lea.vmem %s42_s18, 128  ;;  %p78_p6 = scmp.lt.s32.totalorder %s42_s18, %s42_s18 }
  0x10   :  { %p74_p5 = scmp.ne.s32.totalorder %s42_s18, %s73_s19  ;;  %p79_p7 = scmp.lt.s32.totalorder %s73_s19, %s73_s19 }
  0x12   :  { %p80_p8 = por %p79_p7, %p78_p6 }
  0x14   :  { %p81_p9 = pnand %p80_p8, %p74_p5 }
  0x80   :  { %v28_v2 = vpop.permute.xlu0 %27 }
  0x81   :  { %v31_v3 = vsel %vm30_vm0, %v25_v0, %v28_v2 }
  0x82   :  { %v32_v4 = vadd.f32 %v31_v3, %v24_v1 }
  0x84   :  { %34 = vst.msk [vmem:[#allocation5] sm:$0xff] %vm33_vm1, %v32_v4 }
  0x85   :  { %84 = shalt.err (!%p81_p9)
}
  0x86   :  { %44 = dma.vmem_to_hbm [thread:$0]  %s42_s18, 128, %s126_s2, [#allocation4]  }
  0x87   :  { %95 = dma.done.wait [#allocation4], 128  }
  0x88   :  { %96 = vsyncadd [#allocation4], 4294967168 }
  0x89   :  { %48 = vsyncpa [#allocation3], 1 }
  0x8a   :  { %49 = vsyncpa [#allocation4], 1 }

</bundles_post_ra>
